<compile_context>
chip_gen: v7x
topology: tpu7x:2x2x1
jax: 0.10.0
libtpu: 0.0.40
codegen_flags: <defaults>
</compile_context>

<pallas_src>
import functools

import jax
import jax.numpy as jnp
from jax.experimental import pallas as pl
from jax.experimental.pallas import tpu as pltpu


def _circle_loss_kernel(x_ref, t_ref, o_ref, *, m, gamma, training):
    s = x_ref[...].astype(jnp.float32)                 # (tb, C) f32
    tb, C = s.shape
    tgt = t_ref[...]                                   # (tb, 1) int32

    col = jax.lax.broadcasted_iota(jnp.int32, (tb, C), 1)
    is_tgt = col == tgt                                # (tb, C) one-hot lane mask

    # Target-class similarity as a (tb, 1) column: a single masked lane-reduce.
    s_t = jnp.sum(jnp.where(is_tgt, s, 0.0), axis=-1, keepdims=True)

    if training:
        # Non-target logit everywhere, target logit on the cheap (tb, 1) column,
        # one select to splice them, one scale by gamma.  No alpha/delta
        # tensors, no second full-tile where+reduce to recover z[target].
        zp = jnp.maximum(s + m, 0.0) * (s - m)                       # (tb, C)
        zt = jnp.maximum((1.0 + m) - s_t, 0.0) * (s_t - (1.0 - m))   # (tb, 1)
        z = jnp.where(is_tgt, zt, zp) * gamma
        z_t = zt * gamma                                             # (tb, 1)
    else:
        z = s * gamma
        z_t = s_t * gamma

    # Cross entropy per row:  lse(z) - z[target]
    zmax = jnp.max(z, axis=-1, keepdims=True)
    lse = zmax + jnp.log(jnp.sum(jnp.exp(z - zmax), axis=-1, keepdims=True))
    o_ref[...] = lse - z_t                             # (tb, 1) per-row loss


def circle_loss(inputs, target, *, m=0.25, gamma=256.0, training=True,
                tile_rows=None, vmem_budget_bytes=24 * 1024 * 1024):
    """inputs: (B, C) float array (f32 or bf16), target: (B,) int array.

    Returns the scalar f32 CircleLoss.  On v5e/v6e feeding bf16 `inputs` halves
    HBM traffic (the kernel casts to f32 internally).
    """
    B, C = inputs.shape
    itemsize = jnp.dtype(inputs.dtype).itemsize
    row_align = 8 * max(1, 4 // itemsize)              # 8 for f32, 16 for bf16/f16
    b_aligned = ((B + row_align - 1) // row_align) * row_align

    if tile_rows is None:
        # Per-row VMEM cost:
        #   2 double-buffered input rows (native dtype)
        # + ~6 tile-sized f32 intermediates (cast s, mask, zp, z, exp temp, slack)
        # + lane-padded (rows, 1) target + output blocks: 512 B/row, x2 buffers each
        bytes_per_row = 2 * C * itemsize + 6 * C * 4 + 4 * 512
        tile_rows = (vmem_budget_bytes // bytes_per_row) // row_align * row_align
        tile_rows = max(row_align, int(tile_rows))
        # Keep >= 4 grid steps (megacore sharding on v7x + pipelining) when the
        # batch is big enough that the shrunken block is still >= 1 MiB.
        quarter = (b_aligned // 4) // row_align * row_align
        if quarter * C * itemsize >= (1 << 20):
            tile_rows = min(tile_rows, quarter)
    # Don't tile beyond what the (alignment-padded) batch needs.
    tile_rows = max(row_align, min(int(tile_rows), b_aligned))

    B_pad = pl.cdiv(B, tile_rows) * tile_rows

    x = inputs
    t = target.astype(jnp.int32).reshape(B, 1)
    if B_pad != B:
        x = jnp.pad(x, ((0, B_pad - B), (0, 0)))
        t = jnp.pad(t, ((0, B_pad - B), (0, 0)))

    grid = (B_pad // tile_rows,)
    kernel = functools.partial(
        _circle_loss_kernel, m=float(m), gamma=float(gamma), training=bool(training)
    )

    per_row = pl.pallas_call(
        kernel,
        out_shape=jax.ShapeDtypeStruct((B_pad, 1), jnp.float32),
        grid_spec=pltpu.PrefetchScalarGridSpec(
            num_scalar_prefetch=0,
            grid=grid,
            in_specs=[
                pl.BlockSpec((tile_rows, C), lambda i: (i, 0)),   # similarities
                pl.BlockSpec((tile_rows, 1), lambda i: (i, 0)),   # targets
            ],
            out_specs=pl.BlockSpec((tile_rows, 1), lambda i: (i, 0)),
        ),
        compiler_params=pltpu.CompilerParams(
            dimension_semantics=("parallel",),       # steps independent -> megacore-friendly
            vmem_limit_bytes=32 * 1024 * 1024,       # budget (24 MiB) + headroom; OK on all gens
        ),
    )(x, t)

    # Mean over the real (unpadded) batch; padded rows are discarded here, so
    # they never need in-kernel masking.
    return jnp.mean(per_row[:B, 0])


def _circle_loss_ref(inputs, target, m=0.25, gamma=256.0, training=True):
    s = inputs.astype(jnp.float32)
    C = s.shape[1]
    one_hot = jax.nn.one_hot(target, C, dtype=jnp.float32)
    if training:
        alpha_p = jnp.maximum(s + m, 0.0)
        alpha_n = jnp.maximum(1.0 + m - s, 0.0)
        alpha = jnp.where(one_hot > 0, alpha_n, alpha_p)
        delta = jnp.where(one_hot > 0, 1.0 - m, m)
        z = alpha * (s - delta) * gamma
    else:
        z = s * gamma
    logp = jax.nn.log_softmax(z, axis=-1)
    return -jnp.mean(jnp.sum(one_hot * logp, axis=-1))


if __name__ == "__main__":
    key = jax.random.PRNGKey(0)
    k1, k2, k3, k4, k5, k6 = jax.random.split(key, 6)

    # Case 1: f32, aligned shapes (B=8 cosine-similarity rows, C=128 classes)
    B, C = 8, 128
    x = jax.random.uniform(k1, (B, C), jnp.float32, -1.0, 1.0)
    y = jax.random.randint(k2, (B,), 0, C, dtype=jnp.int32)
    loss = jax.block_until_ready(jax.jit(circle_loss)(x, y))
    ref = _circle_loss_ref(x, y)
    assert jnp.allclose(loss, ref, rtol=1e-4, atol=5e-3), (loss, ref)

    # Case 2: ragged batch / C not a multiple of 128 (padding + lane-mask path)
    B2, C2 = 5, 96
    x2 = jax.random.uniform(k3, (B2, C2), jnp.float32, -1.0, 1.0)
    y2 = jax.random.randint(k4, (B2,), 0, C2, dtype=jnp.int32)
    loss2 = jax.block_until_ready(jax.jit(circle_loss)(x2, y2))
    ref2 = _circle_loss_ref(x2, y2)
    assert jnp.allclose(loss2, ref2, rtol=1e-4, atol=5e-3), (loss2, ref2)

    # Case 3: bf16 similarities (recommended caller dtype on v5e/v6e)
    B3, C3 = 16, 256
    x3 = jax.random.uniform(k5, (B3, C3), jnp.float32, -1.0, 1.0).astype(jnp.bfloat16)
    y3 = jax.random.randint(k6, (B3,), 0, C3, dtype=jnp.int32)
    loss3 = jax.block_until_ready(jax.jit(circle_loss)(x3, y3))
    ref3 = _circle_loss_ref(x3, y3)
    assert jnp.allclose(loss3, ref3, rtol=1e-4, atol=5e-3), (loss3, ref3)

    # Case 4: eval mode (module.training == False -> plain scaled cross entropy)
    loss4 = jax.block_until_ready(
        jax.jit(functools.partial(circle_loss, training=False))(x, y))
    ref4 = _circle_loss_ref(x, y, training=False)
    assert jnp.allclose(loss4, ref4, rtol=1e-4, atol=5e-3), (loss4, ref4)

    print("KERNEL_OK")
</pallas_src>

<mosaic_0001>
module attributes {stable_mosaic.version = 11 : i64} {
  func.func @_circle_loss_kernel(%arg0: i32, %arg1: memref<8x128xf32, #tpu.memory_space<vmem>>, %arg2: memref<8x1xi32, #tpu.memory_space<vmem>>, %arg3: memref<8x1xf32, #tpu.memory_space<vmem>>) attributes {dimension_semantics = [#tpu.dimension_semantics<parallel>], iteration_bounds = array<i64: 1>, scalar_prefetch = 0 : i64, scratch_operands = 0 : i64, tpu.core_type = #tpu.core_type<tc>, window_params = [{transform_indices = @transform_0, window_bounds = array<i64: 8, 128>}, {transform_indices = @transform_1, window_bounds = array<i64: 8, 1>}, {transform_indices = @transform_2, window_bounds = array<i64: 8, 1>}]} {
    %c0 = arith.constant 0 : index
    %c0_0 = arith.constant 0 : index
    %0 = vector.load %arg1[%c0, %c0_0] : memref<8x128xf32, #tpu.memory_space<vmem>>, vector<8x128xf32>
    %c0_1 = arith.constant 0 : index
    %c0_2 = arith.constant 0 : index
    %1 = vector.load %arg2[%c0_1, %c0_2] : memref<8x1xi32, #tpu.memory_space<vmem>>, vector<8x1xi32>
    %2 = tpu.iota {dimensions = array<i32: 1>} : vector<8x128xi32>
    %3 = vector.broadcast %1 : vector<8x1xi32> to vector<8x128xi32>
    %4 = arith.cmpi eq, %2, %3 : vector<8x128xi32>
    %cst = arith.constant 0.000000e+00 : f32
    %5 = vector.broadcast %cst : f32 to vector<8x128xf32>
    %6 = arith.select %4, %0, %5 : vector<8x128xi1>, vector<8x128xf32>
    %cst_3 = arith.constant dense<0.000000e+00> : vector<8xf32>
    %7 = vector.multi_reduction <add>, %6, %cst_3 [1] : vector<8x128xf32> to vector<8xf32>
    %8 = vector.shape_cast %7 : vector<8xf32> to vector<8x1xf32>
    %cst_4 = arith.constant 2.500000e-01 : f32
    %9 = vector.broadcast %cst_4 : f32 to vector<8x128xf32>
    %10 = arith.addf %0, %9 : vector<8x128xf32>
    %cst_5 = arith.constant 0.000000e+00 : f32
    %11 = vector.broadcast %cst_5 : f32 to vector<8x128xf32>
    %12 = arith.maximumf %10, %11 : vector<8x128xf32>
    %cst_6 = arith.constant 2.500000e-01 : f32
    %13 = vector.broadcast %cst_6 : f32 to vector<8x128xf32>
    %14 = arith.subf %0, %13 : vector<8x128xf32>
    %15 = arith.mulf %12, %14 : vector<8x128xf32>
    %cst_7 = arith.constant 1.250000e+00 : f32
    %16 = vector.broadcast %cst_7 : f32 to vector<8x1xf32>
    %17 = arith.subf %16, %8 : vector<8x1xf32>
    %cst_8 = arith.constant 0.000000e+00 : f32
    %18 = vector.broadcast %cst_8 : f32 to vector<8x1xf32>
    %19 = arith.maximumf %17, %18 : vector<8x1xf32>
    %cst_9 = arith.constant 7.500000e-01 : f32
    %20 = vector.broadcast %cst_9 : f32 to vector<8x1xf32>
    %21 = arith.subf %8, %20 : vector<8x1xf32>
    %22 = arith.mulf %19, %21 : vector<8x1xf32>
    %23 = vector.shape_cast %22 : vector<8x1xf32> to vector<8x1xf32>
    %24 = vector.broadcast %23 : vector<8x1xf32> to vector<8x128xf32>
    %25 = arith.select %4, %24, %15 : vector<8x128xi1>, vector<8x128xf32>
    %cst_10 = arith.constant 2.560000e+02 : f32
    %26 = vector.broadcast %cst_10 : f32 to vector<8x128xf32>
    %27 = arith.mulf %25, %26 : vector<8x128xf32>
    %cst_11 = arith.constant 2.560000e+02 : f32
    %28 = vector.broadcast %cst_11 : f32 to vector<8x1xf32>
    %29 = arith.mulf %22, %28 : vector<8x1xf32>
    %cst_12 = arith.constant dense<0xFF800000> : vector<8xf32>
    %30 = vector.multi_reduction <maximumf>, %27, %cst_12 [1] : vector<8x128xf32> to vector<8xf32>
    %31 = vector.shape_cast %30 : vector<8xf32> to vector<8x1xf32>
    %32 = vector.broadcast %31 : vector<8x1xf32> to vector<8x128xf32>
    %33 = arith.subf %27, %32 : vector<8x128xf32>
    %34 = math.exp %33 : vector<8x128xf32>
    %cst_13 = arith.constant dense<0.000000e+00> : vector<8xf32>
    %35 = vector.multi_reduction <add>, %34, %cst_13 [1] : vector<8x128xf32> to vector<8xf32>
    %36 = vector.shape_cast %35 : vector<8xf32> to vector<8x1xf32>
    %37 = math.log %36 : vector<8x1xf32>
    %38 = arith.addf %31, %37 : vector<8x1xf32>
    %39 = arith.subf %38, %29 : vector<8x1xf32>
    %c0_14 = arith.constant 0 : index
    %c0_15 = arith.constant 0 : index
    %40 = vector.load %arg3[%c0_14, %c0_15] : memref<8x1xf32, #tpu.memory_space<vmem>>, vector<8x1xf32>
    tpu.vector_store %arg3[%c0_14, %c0_15], %39 {strides = array<i32>} : memref<8x1xf32, #tpu.memory_space<vmem>>, vector<8x1xf32>,
    return
  }
  func.func @transform_0(%arg0: i32) -> (i32, i32) {
    %c0_i32 = arith.constant 0 : i32
    %c0_i32_0 = arith.constant 0 : i32
    return %arg0, %c0_i32 : i32, i32
  }
  func.func @transform_1(%arg0: i32) -> (i32, i32) {
    %c0_i32 = arith.constant 0 : i32
    %c0_i32_0 = arith.constant 0 : i32
    return %arg0, %c0_i32 : i32, i32
  }
  func.func @transform_2(%arg0: i32) -> (i32, i32) {
    %c0_i32 = arith.constant 0 : i32
    %c0_i32_0 = arith.constant 0 : i32
    return %arg0, %c0_i32 : i32, i32
  }
}

</mosaic_0001>

<bundles_post_ra>
// kernel: circle_loss.1
= control target key start
LH: loop header
LB: loop body
LE: loop exit
PB: predicated region body
PF: predicated region fallthrough
CT: control target
= control target key end

     0   :  { %v58_v0 = vmov 0   ;;  %v13_v2 = vlaneseq  ;;  %vm44_vm1 = vcmask 7168   ;;  %s83_s1 = inlined_call_operand.vmem [shape: s32[8,1], index: 1, kind: input, shape index: {}]   ;;  %s84_s0 = inlined_call_operand.vmem [shape: f32[8,128], index: 0, kind: input, shape index: {}]   ;;  %s85_s2 = inlined_call_operand.vmem [shape: f32[8,1], index: 2, kind: output, shape index: {}]  }
   0x1   :  { %53 = vset.pattern.permute.xlu0 %v58_v0  ;;  %v12_v1 = vld [vmem:[%s83_s1] sm:$0xff] }
   0x2   :  { %16 = vperm.xlu0 %53, %v12_v1   ;;  %v14_v3 = vand.u32 127, %v13_v2  ;;  %v11_v4 = vld [vmem:[%s84_s0] sm:$0xff] }
   0x3   :  { %v22_v7 = vadd.f32 0.25, %v11_v4  ;;  %v50_v9 = vadd.f32 -0.25, %v11_v4 }
   0x5   :  { %v23_v8 = vmax.f32 %v22_v7, 0.0 }
   0x7   :  { %v25_v14 = vmul.f32 %v50_v9, %v23_v8 }
  0x81   :  { %v17_v5 = vpop.permute.xlu0 %16 }
  0x82   :  { %vm18_vm0 = vcmp.eq.s32.totalorder %v14_v3, %v17_v5 }
  0x83   :  { %v19_v6 = vsel %vm18_vm0, %v11_v4, 0.0 }
  0x84   :  { %20 = vadd.xlane.f32.xlu0 %v19_v6 }
 0x111   :  { %v21_v10 = vpop.xlane.xlu0 %20 }
 0x112   :  { %v26_v11 = vsub.f32 1.25, %v21_v10  ;;  %v51_v13 = vadd.f32 -0.75, %v21_v10 }
 0x114   :  { %v27_v12 = vmax.f32 %v26_v11, 0.0 }
 0x116   :  { %v29_v15 = vmul.f32 %v51_v13, %v27_v12 }
 0x118   :  { %v30_v16 = vsel %vm18_vm0, %v29_v15, %v25_v14  ;;  %v32_v25 = vmul.f32 256.0, %v29_v15 }
 0x119   :  { %v31_v17 = vmul.f32 256.0, %v30_v16 }
 0x11b   :  { %33 = vmax.xlane.f32.xlu1 %v31_v17 }
 0x1a8   :  { %v34_v18 = vpop.xlane.xlu1 %33 }
 0x1a9   :  { %v35_v19 = vsub.f32 %v31_v17, %v34_v18 }
 0x1ab   :  { %v36_v20 = vmul.f32 1.442695, %v35_v19 }
 0x1ad   :  { %54 = vpow2.f32 %v36_v20 }
 0x1b7   :  { %v55_v21 = vpop.eup %54 }
 0x1b8   :  { %38 = vadd.xlane.f32.xlu1 %v55_v21 }
 0x245   :  { %v39_v22 = vpop.xlane.xlu1 %38 }
 0x246   :  { %56 = vlog2.f32 %v39_v22 }
 0x250   :  { %v57_v23 = vpop.eup %56 }
 0x251   :  { %v41_v24 = vmul.f32 0.6931472, %v57_v23 }
 0x253   :  { %v42_v26 = vadd.f32 %v41_v24, %v34_v18 }
 0x255   :  { %v43_v27 = vsub.f32 %v42_v26, %v32_v25 }
 0x257   :  { %45 = vst.msk [vmem:[%s85_s2] sm:$0xff] %vm44_vm1, %v43_v27 }

</bundles_post_ra>
